<compile_context>
chip_gen: v5e
topology: v5e:2x2
jax: 0.10.0
libtpu: 0.0.40
codegen_flags: <defaults>
</compile_context>

<pallas_src>
import functools

import jax
import jax.numpy as jnp
from jax.experimental import pallas as pl
from jax.experimental.pallas import tpu as pltpu


# ----------------------------- Pallas kernel -----------------------------
def _moe_kernel(x_ref, wg_ref, bg_ref, eid_ref, w1_ref, b1_ref, w2_ref, b2_ref,
                out_ref, xb_ref, top1_ref, top2_ref, *, num_experts):
    """Grid = (token row tiles, fused-hidden chunks)."""
    j = pl.program_id(1)

    # ---- per-row-tile work, hoisted out of the hidden-chunk loop ----
    @pl.when(j == 0)
    def _():
        x = x_ref[...]                                              # (tm, Dp) f32
        xb_ref[...] = x.astype(jnp.bfloat16)                        # hoisted cast

        # routing on raw gating logits (softmax dropped; only the mask is used)
        logits = jnp.dot(x, wg_ref[...],
                         preferred_element_type=jnp.float32) + bg_ref[...]
        col = jax.lax.broadcasted_iota(jnp.int32, logits.shape, 1)  # (tm, E)
        top1_v = jnp.max(logits, axis=-1, keepdims=True)
        top1_i = jnp.min(jnp.where(logits >= top1_v, col, num_experts),
                         axis=-1, keepdims=True)
        rest = jnp.where(col == top1_i, -jnp.inf, logits)
        top2_v = jnp.max(rest, axis=-1, keepdims=True)
        top2_i = jnp.min(jnp.where(rest >= top2_v, col, num_experts),
                         axis=-1, keepdims=True)
        top1_ref[...] = top1_i
        top2_ref[...] = top2_i

        # init the output block with the routed layer-2 bias: sum_e mask_e * b2[e]
        mask_e = jnp.logical_or(col == top1_i, col == top2_i).astype(jnp.float32)
        out_ref[...] = jnp.dot(mask_e, b2_ref[...],
                               preferred_element_type=jnp.float32)

    top1_i = top1_ref[...]                                          # (tm, 1) i32
    top2_i = top2_ref[...]                                          # (tm, 1) i32

    # ---- fused expert layer 1 on this hidden chunk: (tm, Dp) @ (Dp, tc) ----
    h = jnp.dot(xb_ref[...], w1_ref[...],
                preferred_element_type=jnp.float32) + b1_ref[...]   # (tm, tc) f32
    h = h * jax.nn.sigmoid(h)                                       # Swish (f32)

    # mask columns by owning expert (host-precomputed id row; padding cols have
    # id == num_experts and are therefore always zeroed)
    eid = eid_ref[...]                                              # (1, tc) i32
    keep = jnp.logical_or(eid == top1_i, eid == top2_i)             # (tm, tc)
    h = jnp.where(keep, h, 0.0)

    # ---- fused expert layer 2: (tm, tc) @ (tc, Dp), accumulate into out ----
    out_ref[...] += jnp.dot(h.astype(jnp.bfloat16), w2_ref[...],
                            preferred_element_type=jnp.float32)


# ----------------------------- host-side glue -----------------------------
def _normalize_rows(v):
    # F.normalize(v, dim=-1): unit L2 norm along the last axis (eps = 1e-12)
    n = jnp.sqrt(jnp.sum(v * v, axis=-1, keepdims=True))
    return v / jnp.maximum(n, 1e-12)


def _round_up(x, m):
    return ((x + m - 1) // m) * m


def _physical_vmem_bytes():
    try:
        info = pltpu.get_tpu_info()
        for attr in ("vmem_capacity_bytes", "vmem_bytes", "vmem_size_bytes"):
            v = getattr(info, attr, None)
            if v:
                return int(v)
    except Exception:
        pass
    return 64 * 1024 * 1024   # conservative fallback = v7x per-core VMEM


def _pick_tc(EHp, Dp, weight_budget):
    # Fully VMEM-resident fast path: single-buffered bf16 W1+W2 fit the budget.
    if 4 * Dp * EHp <= weight_budget:
        return EHp
    # Streamed path: double-buffered bf16 W1+W2 chunks cost ~ 8*Dp*tc bytes.
    cap = max(128, (weight_budget // (8 * Dp)) // 128 * 128)
    best, c = 128, 256
    while c <= min(EHp, cap):
        if EHp % c == 0:
            best = c
        c += 128
    return best


def _pick_tm(N, Dp, tc, act_budget):
    # per-row VMEM bytes: x f32 (2 bufs) + x bf16 scratch + out f32 (2 bufs) + h f32
    per_row = 8 * Dp + 2 * Dp + 8 * Dp + 4 * tc + 16
    cap = max(8, act_budget // per_row)
    n8 = _round_up(max(N, 1), 8)
    feasible = [c for c in (1024, 512, 256, 128, 64, 32, 16, 8)
                if c <= cap and c <= n8]
    if not feasible:
        return 8
    # prefer >= 2 row tiles so v7x's two TensorCores both get work
    for c in feasible:
        if _round_up(N, c) // c >= 2:
            return c
    return feasible[0]


def moe_layer(x, params, *, num_experts, tm=None, tc=None, vmem_limit_bytes=None):
    """x: (B, S, D).  Returns (B, S, D) in x.dtype."""
    assert num_experts >= 2, "kernel assumes top-2 routing (num_experts >= 2)"
    B, S, D = x.shape
    N = B * S
    E = num_experts

    # ---- weight-norm glue (plain JAX): weight = normalize(v, dim=-1) * g ----
    wg = _normalize_rows(params["gate_v"]) * params["gate_g"][:, None]        # (E, D)
    w1 = _normalize_rows(params["w1_v"]) * params["w1_g"][:, :, None]         # (E, H, D)
    w2 = _normalize_rows(params["w2_v"]) * params["w2_g"][:, :, None]         # (E, D, H)
    H = w1.shape[1]
    EH = E * H

    # ---- lane-dense padding: D -> Dp, fused hidden axis -> EHp (mults of 128) ----
    Dp = _round_up(D, 128)
    EHp = _round_up(EH, 128)

    wg_t = jnp.zeros((Dp, E), jnp.float32).at[:D].set(wg.T.astype(jnp.float32))
    bg = params["gate_b"].reshape(1, E).astype(jnp.float32)

    # fused layer-1 weight: columns [e*H:(e+1)*H] hold W1[e].T -> (Dp, EHp) bf16
    w1_cat = jnp.zeros((Dp, EHp), jnp.bfloat16).at[:D, :EH].set(
        jnp.transpose(w1, (2, 0, 1)).reshape(D, EH).astype(jnp.bfloat16))
    b1_cat = jnp.zeros((1, EHp), jnp.float32).at[:, :EH].set(
        params["b1"].reshape(1, EH).astype(jnp.float32))

    # fused layer-2 weight: rows [e*H:(e+1)*H] hold W2[e].T -> (EHp, Dp) bf16
    w2_stk = jnp.zeros((EHp, Dp), jnp.bfloat16).at[:EH, :D].set(
        jnp.transpose(w2, (0, 2, 1)).reshape(EH, D).astype(jnp.bfloat16))
    b2 = jnp.zeros((E, Dp), jnp.float32).at[:, :D].set(
        params["b2"].astype(jnp.float32))

    # expert id per fused-hidden column; padding columns get id == E (never routed)
    eid = jnp.full((1, EHp), E, jnp.int32).at[:, :EH].set(
        jnp.repeat(jnp.arange(E, dtype=jnp.int32), H)[None, :])

    # ---- generation-aware tile selection (v7x: 64 MiB VMEM; v5e/v6e: 128 MiB) ----
    if vmem_limit_bytes is None:
        vmem_limit_bytes = min(int(0.75 * _physical_vmem_bytes()), 100 * 1024 * 1024)
    weight_budget = vmem_limit_bytes // 2
    if tc is None:
        tc = _pick_tc(EHp, Dp, weight_budget)
    assert tc % 128 == 0 and EHp % tc == 0, "chunk must be a 128-multiple dividing padded E*H"
    n_kc = EHp // tc

    weight_bytes = 4 * Dp * tc * (1 if n_kc == 1 else 2)
    if tm is None:
        tm = _pick_tm(N, Dp, tc, max(0, vmem_limit_bytes - weight_bytes))
    assert tm % 8 == 0 or tm == N, "row tile must be a multiple of 8"
    Np = _round_up(N, tm)

    x_flat = jnp.zeros((Np, Dp), jnp.float32).at[:N, :D].set(
        x.reshape(N, D).astype(jnp.float32))

    # contiguous HBM layout for streamed W1 chunks: (n_kc, Dp, tc)
    w1_chunks = w1_cat.reshape(Dp, n_kc, tc).transpose(1, 0, 2)

    kernel = functools.partial(_moe_kernel, num_experts=E)
    single = pl.Buffered(1)   # grid-invariant operands: one VMEM buffer, DMA'd once

    def chunk_spec(shape, imap):
        # weight/bias/id chunks: single-buffer when grid-invariant (resident path)
        # TODO(synk): on v5e/v6e with exposed DMA, try pl.Buffered(3) for n_kc > 1.
        if n_kc == 1:
            return pl.BlockSpec(shape, imap, pipeline_mode=single)
        return pl.BlockSpec(shape, imap)

    out_flat = pl.pallas_call(
        kernel,
        out_shape=jax.ShapeDtypeStruct((Np, Dp), jnp.float32),
        grid_spec=pltpu.PrefetchScalarGridSpec(
            num_scalar_prefetch=0,
            grid=(Np // tm, n_kc),
            in_specs=[
                pl.BlockSpec((tm, Dp), lambda i, j: (i, 0)),                       # x tile
                pl.BlockSpec((Dp, E), lambda i, j: (0, 0), pipeline_mode=single),  # gate W
                pl.BlockSpec((1, E), lambda i, j: (0, 0), pipeline_mode=single),   # gate b
                chunk_spec((1, tc), lambda i, j: (0, j)),                          # expert ids
                chunk_spec((None, Dp, tc), lambda i, j: (j, 0, 0)),                # W1 chunk
                chunk_spec((1, tc), lambda i, j: (0, j)),                          # b1 chunk
                chunk_spec((tc, Dp), lambda i, j: (j, 0)),                         # W2 chunk
                pl.BlockSpec((E, Dp), lambda i, j: (0, 0), pipeline_mode=single),  # b2
            ],
            out_specs=pl.BlockSpec((tm, Dp), lambda i, j: (i, 0)),
            scratch_shapes=[
                pltpu.VMEM((tm, Dp), jnp.bfloat16),   # x cast once per row tile
                pltpu.VMEM((tm, 1), jnp.int32),       # top-1 expert index
                pltpu.VMEM((tm, 1), jnp.int32),       # top-2 expert index
            ],
        ),
        compiler_params=pltpu.CompilerParams(
            dimension_semantics=("parallel", "arbitrary"),
            vmem_limit_bytes=vmem_limit_bytes),
    )(x_flat, wg_t, bg, eid, w1_chunks, b1_cat, w2_stk, b2)

    return out_flat[:N, :D].astype(x.dtype).reshape(B, S, D)


# ----------------------- pure-JAX reference (for validation) -----------------------
def moe_reference(x, params, *, num_experts):
    B, S, D = x.shape
    x_flat = x.reshape(-1, D)

    wg = _normalize_rows(params["gate_v"]) * params["gate_g"][:, None]
    gates = jax.nn.softmax(x_flat @ wg.T + params["gate_b"], axis=-1)

    top_k = min(2, num_experts)
    _, top_idx = jax.lax.top_k(gates, top_k)

    w1 = _normalize_rows(params["w1_v"]) * params["w1_g"][:, :, None]
    w2 = _normalize_rows(params["w2_v"]) * params["w2_g"][:, :, None]

    out = jnp.zeros_like(x_flat)
    for i in range(num_experts):
        mask = jnp.any(top_idx == i, axis=1).astype(x.dtype)[:, None]
        xi = x_flat * mask
        h = xi @ w1[i].T + params["b1"][i]
        h = h * jax.nn.sigmoid(h)
        y = h @ w2[i].T + params["b2"][i]
        out = out + mask * y
    return out.reshape(B, S, D)


def init_params(key, dim, hidden_dim, num_experts):
    kg, k1, k2 = jax.random.split(key, 3)
    return {
        # GatingNetwork: WeightNormLinear(dim, num_experts)
        "gate_v": jax.random.normal(kg, (num_experts, dim), jnp.float32),
        "gate_g": jnp.ones((num_experts,), jnp.float32),
        "gate_b": jnp.zeros((num_experts,), jnp.float32),
        # Experts: WeightNormLinear(dim, hidden) -> Swish -> WeightNormLinear(hidden, dim)
        "w1_v": jax.random.normal(k1, (num_experts, hidden_dim, dim), jnp.float32),
        "w1_g": jnp.ones((num_experts, hidden_dim), jnp.float32),
        "b1": jnp.zeros((num_experts, hidden_dim), jnp.float32),
        "w2_v": jax.random.normal(k2, (num_experts, dim, hidden_dim), jnp.float32),
        "w2_g": jnp.ones((num_experts, dim), jnp.float32),
        "b2": jnp.zeros((num_experts, dim), jnp.float32),
    }


if __name__ == "__main__":
    B, S, D = 2, 8, 32
    num_experts = 4
    hidden_dim = D * 4  # 128

    key = jax.random.PRNGKey(0)
    kx, kp = jax.random.split(key)
    x = jax.random.normal(kx, (B, S, D), jnp.float32)
    params = init_params(kp, D, hidden_dim, num_experts)

    ref = moe_reference(x, params, num_experts=num_experts)

    # 1) default auto-tiling: weights are VMEM-resident for this tiny config
    out = jax.block_until_ready(moe_layer(x, params, num_experts=num_experts))
    assert out.shape == (B, S, D)
    # expert matmuls run with bf16 weights on the MXU (f32 accumulation) -> bf16-level tol
    assert jnp.allclose(out, ref, atol=5e-2, rtol=5e-2), "mismatch vs reference (resident)"

    # 2) force the streamed path (tc=128 -> 4 hidden chunks over E*H=512) to exercise
    #    hoisted routing, the expert-id mask and direct out_ref accumulation
    out2 = jax.block_until_ready(moe_layer(x, params, num_experts=num_experts, tc=128))
    assert jnp.allclose(out2, ref, atol=5e-2, rtol=5e-2), "mismatch vs reference (streamed)"

    print("KERNEL_OK")
</pallas_src>

<mosaic_0001>
module attributes {stable_mosaic.version = 11 : i64} {
  func.func @_moe_kernel(%arg0: i32, %arg1: i32, %arg2: memref<8x128xf32, #tpu.memory_space<vmem>>, %arg3: memref<128x4xf32, #tpu.memory_space<vmem>>, %arg4: memref<1x4xf32, #tpu.memory_space<vmem>>, %arg5: memref<1x512xi32, #tpu.memory_space<vmem>>, %arg6: memref<1x128x512xbf16, #tpu.memory_space<vmem>>, %arg7: memref<1x512xf32, #tpu.memory_space<vmem>>, %arg8: memref<512x128xbf16, #tpu.memory_space<vmem>>, %arg9: memref<4x128xf32, #tpu.memory_space<vmem>>, %arg10: memref<8x128xf32, #tpu.memory_space<vmem>>, %arg11: memref<8x128xbf16, #tpu.memory_space<vmem>>, %arg12: memref<8x1xi32, #tpu.memory_space<vmem>>, %arg13: memref<8x1xi32, #tpu.memory_space<vmem>>) attributes {dimension_semantics = [#tpu.dimension_semantics<parallel>, #tpu.dimension_semantics<arbitrary>], iteration_bounds = array<i64: 2, 1>, scalar_prefetch = 0 : i64, scratch_operands = 3 : i64, tpu.core_type = #tpu.core_type<tc>, window_params = [{transform_indices = @transform_0, window_bounds = array<i64: 8, 128>}, {pipeline_mode = #tpu.pipeline_mode<synchronous>, transform_indices = @transform_1, window_bounds = array<i64: 128, 4>}, {pipeline_mode = #tpu.pipeline_mode<synchronous>, transform_indices = @transform_2, window_bounds = array<i64: 1, 4>}, {pipeline_mode = #tpu.pipeline_mode<synchronous>, transform_indices = @transform_3, window_bounds = array<i64: 1, 512>}, {pipeline_mode = #tpu.pipeline_mode<synchronous>, transform_indices = @transform_4, window_bounds = array<i64: 1, 128, 512>}, {pipeline_mode = #tpu.pipeline_mode<synchronous>, transform_indices = @transform_5, window_bounds = array<i64: 1, 512>}, {pipeline_mode = #tpu.pipeline_mode<synchronous>, transform_indices = @transform_6, window_bounds = array<i64: 512, 128>}, {pipeline_mode = #tpu.pipeline_mode<synchronous>, transform_indices = @transform_7, window_bounds = array<i64: 4, 128>}, {transform_indices = @transform_8, window_bounds = array<i64: 8, 128>}]} {
    %c0_i32 = arith.constant 0 : i32
    %0 = arith.cmpi eq, %arg1, %c0_i32 : i32
    %1 = arith.extui %0 : i1 to i32
    %c0_i32_0 = arith.constant 0 : i32
    %2 = arith.cmpi ne, %1, %c0_i32_0 : i32
    scf.if %2 {
      %c0_22 = arith.constant 0 : index
      %c0_23 = arith.constant 0 : index
      %34 = vector.load %arg2[%c0_22, %c0_23] : memref<8x128xf32, #tpu.memory_space<vmem>>, vector<8x128xf32>
      %35 = arith.truncf %34 : vector<8x128xf32> to vector<8x128xbf16>
      %c0_24 = arith.constant 0 : index
      %c0_25 = arith.constant 0 : index
      %36 = vector.load %arg11[%c0_24, %c0_25] : memref<8x128xbf16, #tpu.memory_space<vmem>>, vector<8x128xbf16>
      tpu.vector_store %arg11[%c0_24, %c0_25], %35 {strides = array<i32>} : memref<8x128xbf16, #tpu.memory_space<vmem>>, vector<8x128xbf16>,
      %c0_26 = arith.constant 0 : index
      %c0_27 = arith.constant 0 : index
      %37 = vector.load %arg3[%c0_26, %c0_27] : memref<128x4xf32, #tpu.memory_space<vmem>>, vector<128x4xf32>
      %cst_28 = arith.constant dense<0.000000e+00> : vector<8x4xf32>
      %38 = tpu.matmul %34, %37, %cst_28 {dimension_numbers = #tpu.dot_dimension_numbers<[1], [0], [0], [1], [0, 0, 1, 1], [], []>} : vector<8x128xf32>, vector<128x4xf32>, vector<8x4xf32> -> vector<8x4xf32>
      %c0_29 = arith.constant 0 : index
      %c0_30 = arith.constant 0 : index
      %39 = vector.load %arg4[%c0_29, %c0_30] : memref<1x4xf32, #tpu.memory_space<vmem>>, vector<1x4xf32>
      %40 = vector.broadcast %39 : vector<1x4xf32> to vector<8x4xf32>
      %41 = arith.addf %38, %40 : vector<8x4xf32>
      %42 = tpu.iota {dimensions = array<i32: 1>} : vector<8x4xi32>
      %cst_31 = arith.constant dense<0xFF800000> : vector<8xf32>
      %43 = vector.multi_reduction <maximumf>, %41, %cst_31 [1] : vector<8x4xf32> to vector<8xf32>
      %44 = vector.shape_cast %43 : vector<8xf32> to vector<8x1xf32>
      %45 = vector.broadcast %44 : vector<8x1xf32> to vector<8x4xf32>
      %46 = arith.cmpf oge, %41, %45 : vector<8x4xf32>
      %c4_i32 = arith.constant 4 : i32
      %47 = vector.broadcast %c4_i32 : i32 to vector<8x4xi32>
      %48 = arith.select %46, %42, %47 : vector<8x4xi1>, vector<8x4xi32>
      %cst_32 = arith.constant dense<2147483647> : vector<8xi32>
      %49 = vector.multi_reduction <minsi>, %48, %cst_32 [1] : vector<8x4xi32> to vector<8xi32>
      %50 = vector.shape_cast %49 : vector<8xi32> to vector<8x1xi32>
      %51 = vector.broadcast %50 : vector<8x1xi32> to vector<8x4xi32>
      %52 = arith.cmpi eq, %42, %51 : vector<8x4xi32>
      %cst_33 = arith.constant 0xFF800000 : f32
      %53 = vector.broadcast %cst_33 : f32 to vector<8x4xf32>
      %54 = arith.select %52, %53, %41 : vector<8x4xi1>, vector<8x4xf32>
      %cst_34 = arith.constant dense<0xFF800000> : vector<8xf32>
      %55 = vector.multi_reduction <maximumf>, %54, %cst_34 [1] : vector<8x4xf32> to vector<8xf32>
      %56 = vector.shape_cast %55 : vector<8xf32> to vector<8x1xf32>
      %57 = vector.broadcast %56 : vector<8x1xf32> to vector<8x4xf32>
      %58 = arith.cmpf oge, %54, %57 : vector<8x4xf32>
      %c4_i32_35 = arith.constant 4 : i32
      %59 = vector.broadcast %c4_i32_35 : i32 to vector<8x4xi32>
      %60 = arith.select %58, %42, %59 : vector<8x4xi1>, vector<8x4xi32>
      %cst_36 = arith.constant dense<2147483647> : vector<8xi32>
      %61 = vector.multi_reduction <minsi>, %60, %cst_36 [1] : vector<8x4xi32> to vector<8xi32>
      %62 = vector.shape_cast %61 : vector<8xi32> to vector<8x1xi32>
      %c0_37 = arith.constant 0 : index
      %c0_38 = arith.constant 0 : index
      %63 = vector.load %arg12[%c0_37, %c0_38] : memref<8x1xi32, #tpu.memory_space<vmem>>, vector<8x1xi32>
      tpu.vector_store %arg12[%c0_37, %c0_38], %50 {strides = array<i32>} : memref<8x1xi32, #tpu.memory_space<vmem>>, vector<8x1xi32>,
      %c0_39 = arith.constant 0 : index
      %c0_40 = arith.constant 0 : index
      %64 = vector.load %arg13[%c0_39, %c0_40] : memref<8x1xi32, #tpu.memory_space<vmem>>, vector<8x1xi32>
      tpu.vector_store %arg13[%c0_39, %c0_40], %62 {strides = array<i32>} : memref<8x1xi32, #tpu.memory_space<vmem>>, vector<8x1xi32>,
      %65 = vector.broadcast %50 : vector<8x1xi32> to vector<8x4xi32>
      %66 = arith.cmpi eq, %42, %65 : vector<8x4xi32>
      %67 = vector.broadcast %62 : vector<8x1xi32> to vector<8x4xi32>
      %68 = arith.cmpi eq, %42, %67 : vector<8x4xi32>
      %69 = arith.ori %66, %68 : vector<8x4xi1>
      %70 = arith.extui %69 : vector<8x4xi1> to vector<8x4xi32>
      %71 = arith.sitofp %70 : vector<8x4xi32> to vector<8x4xf32>
      %c0_41 = arith.constant 0 : index
      %c0_42 = arith.constant 0 : index
      %72 = vector.load %arg9[%c0_41, %c0_42] : memref<4x128xf32, #tpu.memory_space<vmem>>, vector<4x128xf32>
      %cst_43 = arith.constant dense<0.000000e+00> : vector<8x128xf32>
      %73 = tpu.matmul %71, %72, %cst_43 {dimension_numbers = #tpu.dot_dimension_numbers<[1], [0], [0], [1], [0, 0, 1, 1], [], []>} : vector<8x4xf32>, vector<4x128xf32>, vector<8x128xf32> -> vector<8x128xf32>
      %c0_44 = arith.constant 0 : index
      %c0_45 = arith.constant 0 : index
      %74 = vector.load %arg10[%c0_44, %c0_45] : memref<8x128xf32, #tpu.memory_space<vmem>>, vector<8x128xf32>
      tpu.vector_store %arg10[%c0_44, %c0_45], %73 {strides = array<i32>} : memref<8x128xf32, #tpu.memory_space<vmem>>, vector<8x128xf32>,
    } else {
    }
    %c0 = arith.constant 0 : index
    %c0_1 = arith.constant 0 : index
    %3 = vector.load %arg12[%c0, %c0_1] : memref<8x1xi32, #tpu.memory_space<vmem>>, vector<8x1xi32>
    %c0_2 = arith.constant 0 : index
    %c0_3 = arith.constant 0 : index
    %4 = vector.load %arg13[%c0_2, %c0_3] : memref<8x1xi32, #tpu.memory_space<vmem>>, vector<8x1xi32>
    %c0_4 = arith.constant 0 : index
    %c0_5 = arith.constant 0 : index
    %5 = vector.load %arg11[%c0_4, %c0_5] : memref<8x128xbf16, #tpu.memory_space<vmem>>, vector<8x128xbf16>
    %c0_6 = arith.constant 0 : index
    %c0_7 = arith.constant 0 : index
    %c0_8 = arith.constant 0 : index
    %6 = vector.load %arg6[%c0_6, %c0_7, %c0_8] : memref<1x128x512xbf16, #tpu.memory_space<vmem>>, vector<1x128x512xbf16>
    %7 = vector.shape_cast %6 : vector<1x128x512xbf16> to vector<128x512xbf16>
    %cst = arith.constant dense<0.000000e+00> : vector<8x512xf32>
    %8 = tpu.matmul %5, %7, %cst {dimension_numbers = #tpu.dot_dimension_numbers<[1], [0], [0], [1], [0, 0, 1, 1], [], []>} : vector<8x128xbf16>, vector<128x512xbf16>, vector<8x512xf32> -> vector<8x512xf32>
    %c0_9 = arith.constant 0 : index
    %c0_10 = arith.constant 0 : index
    %9 = vector.load %arg7[%c0_9, %c0_10] : memref<1x512xf32, #tpu.memory_space<vmem>>, vector<1x512xf32>
    %10 = vector.broadcast %9 : vector<1x512xf32> to vector<8x512xf32>
    %11 = arith.addf %8, %10 : vector<8x512xf32>
    %12 = arith.negf %11 : vector<8x512xf32>
    %13 = math.exp %12 : vector<8x512xf32>
    %cst_11 = arith.constant 1.000000e+00 : f32
    %14 = vector.broadcast %cst_11 : f32 to vector<8x512xf32>
    %15 = arith.addf %14, %13 : vector<8x512xf32>
    %16 = arith.divf %14, %15 : vector<8x512xf32>
    %17 = arith.mulf %11, %16 : vector<8x512xf32>
    %c0_12 = arith.constant 0 : index
    %c0_13 = arith.constant 0 : index
    %18 = vector.load %arg5[%c0_12, %c0_13] : memref<1x512xi32, #tpu.memory_space<vmem>>, vector<1x512xi32>
    %19 = vector.broadcast %18 : vector<1x512xi32> to vector<8x512xi32>
    %20 = vector.broadcast %3 : vector<8x1xi32> to vector<8x512xi32>
    %21 = arith.cmpi eq, %19, %20 : vector<8x512xi32>
    %22 = vector.broadcast %18 : vector<1x512xi32> to vector<8x512xi32>
    %23 = vector.broadcast %4 : vector<8x1xi32> to vector<8x512xi32>
    %24 = arith.cmpi eq, %22, %23 : vector<8x512xi32>
    %25 = arith.ori %21, %24 : vector<8x512xi1>
    %cst_14 = arith.constant 0.000000e+00 : f32
    %26 = vector.broadcast %cst_14 : f32 to vector<8x512xf32>
    %27 = arith.select %25, %17, %26 : vector<8x512xi1>, vector<8x512xf32>
    %c0_15 = arith.constant 0 : index
    %c0_16 = arith.constant 0 : index
    %28 = vector.load %arg10[%c0_15, %c0_16] : memref<8x128xf32, #tpu.memory_space<vmem>>, vector<8x128xf32>
    %29 = arith.truncf %27 : vector<8x512xf32> to vector<8x512xbf16>
    %c0_17 = arith.constant 0 : index
    %c0_18 = arith.constant 0 : index
    %30 = vector.load %arg8[%c0_17, %c0_18] : memref<512x128xbf16, #tpu.memory_space<vmem>>, vector<512x128xbf16>
    %cst_19 = arith.constant dense<0.000000e+00> : vector<8x128xf32>
    %31 = tpu.matmul %29, %30, %cst_19 {dimension_numbers = #tpu.dot_dimension_numbers<[1], [0], [0], [1], [0, 0, 1, 1], [], []>} : vector<8x512xbf16>, vector<512x128xbf16>, vector<8x128xf32> -> vector<8x128xf32>
    %32 = arith.addf %28, %31 : vector<8x128xf32>
    %c0_20 = arith.constant 0 : index
    %c0_21 = arith.constant 0 : index
    %33 = vector.load %arg10[%c0_20, %c0_21] : memref<8x128xf32, #tpu.memory_space<vmem>>, vector<8x128xf32>
    tpu.vector_store %arg10[%c0_20, %c0_21], %32 {strides = array<i32>} : memref<8x128xf32, #tpu.memory_space<vmem>>, vector<8x128xf32>,
    return
  }
  func.func @transform_0(%arg0: i32, %arg1: i32) -> (i32, i32) {
    %c0_i32 = arith.constant 0 : i32
    %c0_i32_0 = arith.constant 0 : i32
    return %arg0, %c0_i32 : i32, i32
  }
  func.func @transform_1(%arg0: i32, %arg1: i32) -> (i32, i32) {
    %c0_i32 = arith.constant 0 : i32
    %c0_i32_0 = arith.constant 0 : i32
    %c0_i32_1 = arith.constant 0 : i32
    return %c0_i32, %c0_i32_0 : i32, i32
  }
  func.func @transform_2(%arg0: i32, %arg1: i32) -> (i32, i32) {
    %c0_i32 = arith.constant 0 : i32
    %c0_i32_0 = arith.constant 0 : i32
    %c0_i32_1 = arith.constant 0 : i32
    return %c0_i32, %c0_i32_0 : i32, i32
  }
  func.func @transform_3(%arg0: i32, %arg1: i32) -> (i32, i32) {
    %c0_i32 = arith.constant 0 : i32
    %c0_i32_0 = arith.constant 0 : i32
    return %c0_i32, %arg1 : i32, i32
  }
  func.func @transform_4(%arg0: i32, %arg1: i32) -> (i32, i32, i32) {
    %c0_i32 = arith.constant 0 : i32
    %c0_i32_0 = arith.constant 0 : i32
    %c0_i32_1 = arith.constant 0 : i32
    return %arg1, %c0_i32, %c0_i32_0 : i32, i32, i32
  }
  func.func @transform_5(%arg0: i32, %arg1: i32) -> (i32, i32) {
    %c0_i32 = arith.constant 0 : i32
    %c0_i32_0 = arith.constant 0 : i32
    return %c0_i32, %arg1 : i32, i32
  }
  func.func @transform_6(%arg0: i32, %arg1: i32) -> (i32, i32) {
    %c0_i32 = arith.constant 0 : i32
    %c0_i32_0 = arith.constant 0 : i32
    return %arg1, %c0_i32 : i32, i32
  }
  func.func @transform_7(%arg0: i32, %arg1: i32) -> (i32, i32) {
    %c0_i32 = arith.constant 0 : i32
    %c0_i32_0 = arith.constant 0 : i32
    %c0_i32_1 = arith.constant 0 : i32
    return %c0_i32, %c0_i32_0 : i32, i32
  }
  func.func @transform_8(%arg0: i32, %arg1: i32) -> (i32, i32) {
    %c0_i32 = arith.constant 0 : i32
    %c0_i32_0 = arith.constant 0 : i32
    return %arg0, %c0_i32 : i32, i32
  }
}

</mosaic_0001>

<bundles_post_ra>
// kernel: tpu_custom_call.1
= control target key start
LH: loop header
LB: loop body
LE: loop exit
PB: predicated region body
PF: predicated region fallthrough
CT: control target
= control target key end

     0   :  { %s2261_s0 = inlined_call_operand.vmem [shape: f32[16,128], index: 0, kind: input, shape index: {}]   ;;  %s2262_s1 = inlined_call_operand.vmem [shape: f32[128,4], index: 1, kind: input, shape index: {}]   ;;  %s2263_s2 = inlined_call_operand.vmem [shape: f32[1,4], index: 2, kind: input, shape index: {}]   ;;  %s2264_s3 = inlined_call_operand.vmem [shape: s32[1,512], index: 3, kind: input, shape index: {}]   ;;  %s2265_s4 = inlined_call_operand.hbm [shape: bf16[1,128,512], index: 4, kind: input, shape index: {}]   ;;  %s2266_s5 = inlined_call_operand.vmem [shape: f32[1,512], index: 5, kind: input, shape index: {}]   ;;  %s2267_s6 = inlined_call_operand.hbm [shape: bf16[512,128], index: 6, kind: input, shape index: {}]   ;;  %s2268_s7 = inlined_call_operand.vmem [shape: f32[4,128], index: 7, kind: input, shape index: {}]   ;;  %s2269_s8 = inlined_call_operand.hbm [shape: f32[16,128], index: 8, kind: output, shape index: {}]  }
   0x1   :  { %2271 = sst [smem:[#allocation15_spill]] %s2265_s4 }
   0x2   :  { %13 = vsyncpa [#allocation6], 0 }
   0x3   :  { %14 = vsyncpa [#allocation9], 0 }
   0x4   :  { %15 = vsyncpa [#allocation7], 0 }
   0x5   :  { %17 = vsyncpa [#allocation7 + $0x1], 0  ;;  %s2000_s27 = smov 0   ;;  %s2002_s28 = smov 0  }
   0x6   :  { %s2004_s29 = smov 0   ;;  %s2006_s30 = smov 0  }
   0x7   :  { %s2008_s9 = smov 0   ;;  %s2010_s10 = smov 0  }
   0x8 LB: > { %s1342_s11 = sadd.s32 4294967295, %s1945_s10   ;;  %s1343_s12 = sadd.s32 4294967294, %s1945_s10   ;;  %s1945_s10 = sphi %s2010_s10, %s23_s10   ;;  %s1941_s9 = sphi %s2008_s9, %s2289_s9   ;;  %s1937_s30 = sphi %s2006_s30, %s2288_s30   ;;  %s1933_s29 = sphi %s2004_s29, %s2287_s29   ;;  %s1929_s28 = sphi %s2002_s28, %s2286_s28   ;;  %s1925_s27 = sphi %s2000_s27, %s2285_s27  }
   0x9   : > { %s35_s13 = sadd.s32 1, %s1941_s9  ;;  %s235_s14 = sadd.s32 1, %s1933_s29 }
   0xa   : > { %p37_p0 = scmp.ge.s32.totalorder %s35_s13, 2  ;;  %p245_p1 = scmp.ne.s32.totalorder %s1933_s29, %s1929_s28 }
   0xb   : > { %p246_p2 = scmp.eq.s32.totalorder %s1342_s11, 1  ;;  %p251_p3 = scmp.ne.s32.totalorder %s1929_s28, %s1925_s27 }
   0xc   : > { %s2291_s13 = smov (%p37_p0, %s35_s13), 0  ;;  %p252_p5 = scmp.eq.s32.totalorder %s1343_s12, 1 }
   0xd   : > { %2272 = sst [smem:[#allocation14_spill]] %s2291_s13  ;;  %p2040_p4 = por %p246_p2, %p245_p1 }
   0xe   : > { %s232_s16 = ssub.s32 %s1941_s9, %s2291_s13  ;;  %p1344_p6 = scmp.ge.s32.totalorder %s1945_s10, 1 }
   0xf   : > { %p233_p7 = scmp.eq.s32.totalorder %s232_s16, 0  ;;  %p2047_p8 = por %p252_p5, %p251_p3 }
  0x10   : > { %p259_p9 = scmp.lt.s32.totalorder %s1945_s10, 3  ;;  %p2059_p11 = scmp.eq.s32.totalorder %s1342_s11, 0 }
  0x11   : > { %s2053_s18 = scalar_select %p233_p7, %s1933_s29, %s235_s14  }
  0x12   : > { %p2055_p10 = pnand %p1344_p6, %p259_p9  ;;  %s2277_s4 = sld [smem:[#allocation15_spill]] }
  0x13   : > { %s1947_s24 = smov [#allocation5]   ;;  %s312_s11 = sshll.u32 %s2267_s6, 4  ;;  %s313_s11 = int_to_ptr.hbm [resolvable:$true] %s312_s11 }
  0x14   : > { %p1708_p12 = pneg %p2055_p10  ;;  %s289_s25 = sshll.u32 %s1947_s24, 4  ;;  %s290_s25 = int_to_ptr.vmem [resolvable:$true] %s289_s25 }
  0x15   : > { %s1948_s14 = smov 256   ;;  %s1949_s16 = smov 16  }
  0x16   : > { %p1709_p13 = pnand %p2059_p11, %p1708_p12  ;;  %s1950_s13 = smov [#allocation8]  }
  0x17   : > { %s314_s21 = sshll.u32 %s1950_s13, 4  ;;  %s1951_s22 = smov 64   ;;  %s315_s21 = int_to_ptr.vmem [resolvable:$true] %s314_s21 }
  0x18   : > { %s287_s23 = sshll.u32 %s2277_s4, 4  ;;  %s1952_s4 = smov 4   ;;  %s288_s23 = int_to_ptr.hbm [resolvable:$true] %s287_s23 }
  0x19   : > { %1711 = dma.hbm_to_vmem [thread:$0]  (!%p1709_p13), %s288_s23, 4096, %s290_s25, [#allocation6], %s1948_s14, %s1948_s14, %s1949_s16  }
  0x1a   : > { %1714 = dma.hbm_to_vmem [thread:$0]  (!%p1709_p13), %s313_s11, 4096, %s315_s21, [#allocation9], %s1951_s22, %s1951_s22, %s1952_s4  }
  0x1b   : > { %340 = sbr.rel (%p2055_p10) target bundleno = 1228 (0x4cc), region = 52 }
  0x20   : > { %1912 = dma.done.wait (%p2059_p11), [#allocation6], 4096  }
  0x21   : > { %1914 = vsyncadd (%p2059_p11), [#allocation6], 4294963200 }
  0x22   : > { %1916 = dma.done.wait (%p2059_p11), [#allocation9], 4096  }
  0x23   : > { %1918 = vsyncadd (%p2059_p11), [#allocation9], 4294963200  ;;  %p387_p0 = scmp.lt.s32.totalorder %s1937_s30, 1  ;;  %v424_v0 = vld [vmem:[%s2262_s1 + $0x78] sm:$0xff]  ;;  %v423_v1 = vld [vmem:[%s2262_s1 + $0x70] sm:$0xff]  ;;  %vm451_vm0 = vcmask 31744   ;;  %v449_v22 = vlaneseq }
  0x24   : > { %429 = vmatpush.msra.mxu0 %v424_v0  ;;  %v422_v2 = vld [vmem:[%s2262_s1 + $0x68] sm:$0xff]  ;;  %v421_v3 = vld [vmem:[%s2262_s1 + $0x60] sm:$0xff]  ;;  %v420_v5 = vld [vmem:[%s2262_s1 + $0x58] sm:$0xff]  ;;  %v1953_v33 = vmov 0   ;;  %vm494_vm3 = vcmask 7168   ;;  %vm505_vm6 = vcmask 1043456  }
  0x25   : > { %s388_s13 = scalar_select %p387_p0, %s1937_s30, 1  ;;  %v419_v7 = vld [vmem:[%s2262_s1 + $0x50] sm:$0xff]  ;;  %v418_v8 = vld [vmem:[%s2262_s1 + $0x48] sm:$0xff]  ;;  %v417_v9 = vld [vmem:[%s2262_s1 + $0x40] sm:$0xff]  ;;  %v2140_v23 = vand.u32 127, %v449_v22  ;;  %1780 = vset.pattern.permute.xlu0 %v1953_v33  ;;  %1781 = vset.pattern.permute.xlu1 %v1953_v33 }
  0x26   : > { %430 = vmatpush.msra.mxu0 %v423_v1  ;;  %v416_v10 = vld [vmem:[%s2262_s1 + $0x38] sm:$0xff]  ;;  %v415_v11 = vld [vmem:[%s2262_s1 + $0x30] sm:$0xff]  ;;  %v414_v12 = vld [vmem:[%s2262_s1 + $0x28] sm:$0xff]  ;;  %s1631_s25 = sshll.u32 %s1937_s30, 3  ;;  %s1879_s19 = scalar_lea.hbm %s2269_s8, 16 }
  0x27   : > { %s1354_s4 = sshll.u32 %s388_s13, 3  ;;  %v413_v13 = vld [vmem:[%s2262_s1 + $0x20] sm:$0xff]  ;;  %v412_v14 = vld [vmem:[%s2262_s1 + $0x18] sm:$0xff]  ;;  %v411_v15 = vld [vmem:[%s2262_s1 + $0x10] sm:$0xff]  ;;  %s1220_s20 = scalar_lea.hbm %s2269_s8, %s1631_s25 }
  0x28   : > { %s390_s14 = scalar_lea.vmem %s2261_s0, %s1354_s4  ;;  %431 = vmatpush.msra.mxu0 %v422_v2  ;;  %v410_v16 = vld [vmem:[%s2262_s1 + $0x8] sm:$0xff]  ;;  %v409_v17 = vld [vmem:[%s2262_s1] sm:$0xff]  ;;  %v1472_v47 = vld [vmem:[#allocation5 + $0xe0] sm:$0xf]  ;;  %s384_s4 = sand.u32 1, %s1929_s28  }
  0x29   : > { %v406_v4 = vld [vmem:[%s390_s14] sm:$0xff]  ;;  %v1662_v49 = vld [vmem:[#allocation5 + $0xe4] sm:$0xf]  ;;  %v1474_v51 = vld [vmem:[#allocation5 + $0xf0] sm:$0xf0]  ;;  %s1353_s24 = sshll.u32 %s384_s4, 3 }
  0x2a   : > { %v407_v6 = vpack.c.bf16 %v406_v4, %v406_v4  ;;  %432 = vmatpush.msra.mxu0 %v421_v3  ;;  %v1782_v18 = vld [vmem:[%s2263_s2] ss:$0 sm:$0xff]  ;;  %v1664_v48 = vld [vmem:[#allocation5 + $0xec] sm:$0xf0]  ;;  %v1456_v52 = vld [vmem:[#allocation5 + $0xc0] sm:$0xf]  ;;  %v1477_v54 = vor.u32 %v1662_v49, %v1474_v51 }
  0x2b   : > { %v1473_v50 = vor.u32 %v1664_v48, %v1472_v47  ;;  %v1660_v53 = vld [vmem:[#allocation5 + $0xcc] sm:$0xf0]  ;;  %v1658_v55 = vld [vmem:[#allocation5 + $0xc4] sm:$0xf]  ;;  %v1458_v56 = vld [vmem:[#allocation5 + $0xd0] sm:$0xf0] }
  0x2c   : > { %408 = vst [vmem:[#allocation2] sm:$0xf] %v407_v6  ;;  %433 = vmatpush.msra.mxu0 %v420_v5  ;;  %v1663_v57 = vld [vmem:[#allocation5 + $0xec] sm:$0xf]  ;;  %v1457_v58 = vor.u32 %v1660_v53, %v1456_v52  ;;  %v1482_v59 = vld [vmem:[#allocation5 + $0xf8] sm:$0xf0]  ;;  %748 = vmatpush.bf16.msra.mxu3 %v1477_v54  ;;  %v1461_v60 = vor.u32 %v1658_v55, %v1458_v56 }
  0x2d   : > { %735 = vmatpush.bf16.msra.mxu2 %v1473_v50  ;;  %v1485_v61 = vor.u32 %v1663_v57, %v1482_v59  ;;  %v1440_v62 = vld [vmem:[#allocation5 + $0xa0] sm:$0xf]  ;;  %v1656_v63 = vld [vmem:[#allocation5 + $0xac] sm:$0xf0]  ;;  %v1659_v0 = vld [vmem:[#allocation5 + $0xcc] sm:$0xf] }
  0x2e   : > { %434 = vmatpush.msra.mxu0 %v419_v7  ;;  %v1654_v1 = vld [vmem:[#allocation5 + $0xa4] sm:$0xf]  ;;  %v1442_v2 = vld [vmem:[#allocation5 + $0xb0] sm:$0xf0]  ;;  %v1466_v3 = vld [vmem:[#allocation5 + $0xd8] sm:$0xf0]  ;;  %v1441_v5 = vor.u32 %v1656_v63, %v1440_v62 }
  0x2f   : > { %v1655_v6 = vld [vmem:[#allocation5 + $0xac] sm:$0xf]  ;;  %v1450_v7 = vld [vmem:[#allocation5 + $0xb8] sm:$0xf0]  ;;  %v1480_v33 = vld [vmem:[#allocation5 + $0xe8] sm:$0xf] }
  0x30   : > { %435 = vmatpush.msra.mxu0 %v418_v8  ;;  %749 = vmatpush.bf16.msra.mxu3 %v1461_v60  ;;  %v1445_v8 = vor.u32 %v1654_v1, %v1442_v2  ;;  %v1640_v47 = vld [vmem:[#allocation5 + $0x2c] sm:$0xf0]  ;;  %v1638_v48 = vld [vmem:[#allocation5 + $0x24] sm:$0xf]  ;;  %v1378_v50 = vld [vmem:[#allocation5 + $0x30] sm:$0xf0] }
  0x31   : > { %736 = vmatpush.bf16.msra.mxu2 %v1457_v58  ;;  %v1448_v51 = vld [vmem:[#allocation5 + $0xa8] sm:$0xf]  ;;  %v1657_v52 = vld [vmem:[#allocation5 + $0xb4] sm:$0xf0]  ;;  %v1639_v55 = vld [vmem:[#allocation5 + $0x2c] sm:$0xf]  ;;  %v1381_v57 = vor.u32 %v1638_v48, %v1378_v50 }
  0x32   : > { %436 = vmatpush.msra.mxu0 %v417_v9  ;;  %v1424_v9 = vld [vmem:[#allocation5 + $0x80] sm:$0xf]  ;;  %v1386_v56 = vld [vmem:[#allocation5 + $0x38] sm:$0xf0]  ;;  %v1636_v59 = vld [vmem:[#allocation5 + $0xc] sm:$0xf0]  ;;  %v1449_v60 = vor.u32 %v1657_v52, %v1448_v51 }
  0x33   : > { %v1360_v58 = vld [vmem:[#allocation5] sm:$0xf]  ;;  %v1634_v62 = vld [vmem:[#allocation5 + $0x4] sm:$0xf]  ;;  %v1362_v63 = vld [vmem:[#allocation5 + $0x10] sm:$0xf0] }
  0x34   : > { %437 = vmatpush.msra.mxu0 %v416_v10  ;;  %v1652_v10 = vld [vmem:[#allocation5 + $0x8c] sm:$0xf0]  ;;  %750 = vmatpush.bf16.msra.mxu3 %v1445_v8  ;;  %v1432_v1 = vld [vmem:[#allocation5 + $0x88] sm:$0xf]  ;;  %v1653_v2 = vld [vmem:[#allocation5 + $0x94] sm:$0xf0] }
  0x35   : > { %737 = vmatpush.bf16.msra.mxu2 %v1441_v5  ;;  %v1370_v5 = vld [vmem:[#allocation5 + $0x18] sm:$0xf0]  ;;  %v1670_v48 = vld [vmem:[#allocation8 + $0x20] sm:$0xff]  ;;  %s386_s11 = scalar_lea.vmem [#allocation10], %s1353_s24  ;;  %s1224_s16 = sshll.u32 %s1220_s20, 4  ;;  %s1225_s16 = int_to_ptr.hbm [resolvable:$true] %s1224_s16 }
  0x36   : > { %438 = vmatpush.msra.mxu0 %v415_v11  ;;  %v1650_v11 = vld [vmem:[#allocation5 + $0x84] sm:$0xf]  ;;  %v1669_v51 = vld [vmem:[#allocation8 + $0x18] sm:$0xff]  ;;  %s1222_s14 = sshll.u32 %s386_s11, 4  ;;  %s1210_s21 = scalar_lea.sflag [#allocation7], %s384_s4  ;;  %s1223_s14 = int_to_ptr.vmem [resolvable:$true] %s1222_s14 }
  0x37   : > { %v1694_v50 = vld [vmem:[#allocation8 + $0xe0] sm:$0xff]  ;;  %v1677_v52 = vld [vmem:[#allocation8 + $0x58] sm:$0xff]  ;;  %s1873_s30 = sshra.s32 %s1225_s16, 4  ;;  %s1874_s30 = int_to_ptr.hbm [resolvable:$true] %s1873_s30 }
  0x38   : > { %439 = vmatpush.msra.mxu0 %v414_v12  ;;  %v1426_v12 = vld [vmem:[#allocation5 + $0x90] sm:$0xf0]  ;;  %s1875_s22 = scalar_lea.hbm %s1874_s30, 8  ;;  %p1880_p5 = scmp.lt.s32.totalorder %s1874_s30, %s2269_s8 }
  0x39   : > { %p1876_p1 = scmp.ne.s32.totalorder %s1874_s30, %s1875_s22  ;;  %p1881_p6 = scmp.lt.s32.totalorder %s1879_s19, %s1875_s22 }
  0x3a   : > { %440 = vmatpush.msra.mxu0 %v413_v13  ;;  %v1453_v13 = vor.u32 %v1655_v6, %v1450_v7  ;;  %v1365_v6 = vor.u32 %v1634_v62, %v1362_v63 }
  0x3b   : > { %p1877_p2 = pnand %p1876_p1, %p2040_p4  ;;  %p1882_p7 = por %p1881_p6, %p1880_p5 }
  0x3c   : > { %441 = vmatpush.msra.mxu0 %v412_v14  ;;  %v1425_v14 = vor.u32 %v1652_v10, %v1424_v9  ;;  %v1433_v9 = vor.u32 %v1653_v2, %v1432_v1 }
  0x3d   : > { %p1878_p3 = pneg %p1877_p2 }
  0x3e   : > { %442 = vmatpush.msra.mxu0 %v411_v15  ;;  %v1651_v15 = vld [vmem:[#allocation5 + $0x8c] sm:$0xf]  ;;  %738 = vmatpush.bf16.msra.mxu2 %v1425_v14 }
  0x3f   : > { %p1883_p9 = pnand %p1882_p7, %p1878_p3 }
  0x40   : > { %443 = vmatpush.msra.mxu0 %v410_v16  ;;  %v1434_v16 = vld [vmem:[#allocation5 + $0x98] sm:$0xf0] }
  0x41   : > { %v1437_v22 = vor.u32 %v1651_v15, %v1434_v16  ;;  %v1400_v15 = vld [vmem:[#allocation5 + $0x48] sm:$0xf]  ;;  %v1645_v16 = vld [vmem:[#allocation5 + $0x54] sm:$0xf0] }
  0x42   : > { %444 = vmatpush.msra.mxu0 %v409_v17  ;;  %v1429_v17 = vor.u32 %v1650_v11, %v1426_v12  ;;  %v532_v11 = vld [vmem:[#allocation2] sm:$0xf]  ;;  %v1416_v12 = vld [vmem:[#allocation5 + $0x68] sm:$0xf] }
  0x43   : > { %445 = vmatmul.f32.vlgmr.msra.gmra.mxu0 %v406_v4  ;;  %v1469_v4 = vor.u32 %v1659_v0, %v1466_v3  ;;  %v1389_v0 = vor.u32 %v1639_v55, %v1386_v56  ;;  %v1361_v3 = vor.u32 %v1636_v59, %v1360_v58  ;;  %v1676_v55 = vld [vmem:[#allocation8 + $0x50] sm:$0xff]  ;;  %v1675_v58 = vld [vmem:[#allocation8 + $0x48] sm:$0xff] }
  0x44   : > { %774 = vmatpush.bf16.msrb.mxu0 %v1485_v61  ;;  %751 = vmatpush.bf16.msra.mxu3 %v1429_v17  ;;  %v1401_v17 = vor.u32 %v1645_v16, %v1400_v15  ;;  %v1692_v56 = vld [vmem:[#allocation8 + $0xd0] sm:$0xff]  ;;  %v1691_v59 = vld [vmem:[#allocation8 + $0xc8] sm:$0xff] }
  0x48   : > { %775 = vmatpush.bf16.msrb.mxu0 %v1469_v4  ;;  %v1635_v4 = vld [vmem:[#allocation5 + $0xc] sm:$0xf] }
  0x4c   : > { %776 = vmatpush.bf16.msrb.mxu0 %v1453_v13  ;;  %v1649_v13 = vld [vmem:[#allocation5 + $0x74] sm:$0xf0] }
  0x4d   : > { %v1417_v14 = vor.u32 %v1649_v13, %v1416_v12  ;;  %v1674_v12 = vld [vmem:[#allocation8 + $0x40] sm:$0xff] }
  0x4e   : > { %v1690_v13 = vld [vmem:[#allocation8 + $0xc0] sm:$0xff] }
  0x50   : > { %777 = vmatpush.bf16.msrb.mxu0 %v1437_v22 }
  0xc0   : > { %v446_v19 = vpop.f32.mrf.mxu0 }
  0xc1   : > { %v447_v20 = vadd.f32 %v1782_v18, %v446_v19  ;;  %v1408_v18 = vld [vmem:[#allocation5 + $0x60] sm:$0xf]  ;;  %v1648_v19 = vld [vmem:[#allocation5 + $0x6c] sm:$0xf0] }
  0xc3   : > { %v452_v21 = vsel %vm451_vm0, %v447_v20, -inf }
  0xc4   : > { %453 = vmax.xlane.f32.xlu0 %v452_v21  ;;  %v1410_v21 = vld [vmem:[#allocation5 + $0x70] sm:$0xf0] }
 0x137   : > { %v454_v24 = vpop.xlane.xlu0 %453 }
 0x138   : > { %vm455_vm1 = vcmp.ge.f32.partialorder %v447_v20, %v454_v24  ;;  %v1392_v24 = vld [vmem:[#allocation5 + $0x40] sm:$0xf] }
 0x139   : > { %v456_v25 = vsel %vm455_vm1, %v2140_v23, 4 }
 0x13a   : > { %v457_v26 = vsel %vm451_vm0, %v456_v25, 2147483647  ;;  %v1644_v25 = vld [vmem:[#allocation5 + $0x4c] sm:$0xf0] }
 0x13b   : > { %v459_v27 = vshra.s32 %v457_v26, 16  ;;  %v458_v29 = vand.u32 65535, %v457_v26  ;;  %v1409_v26 = vor.u32 %v1648_v19, %v1408_v18  ;;  %v1641_v18 = vld [vmem:[#allocation5 + $0x34] sm:$0xf0] }
 0x13d   : > { %v461_v28 = vcvt.s32.f32 %v459_v27  ;;  %v460_v31 = vcvt.s32.f32 %v458_v29  ;;  %v1642_v27 = vld [vmem:[#allocation5 + $0x44] sm:$0xf]  ;;  %v1418_v29 = vld [vmem:[#allocation5 + $0x78] sm:$0xf0]  ;;  %739 = vmatpush.bf16.msra.mxu2 %v1409_v26 }
 0x13f   : > { %462 = vmin.xlane.f32.xlu0 %v461_v28 }
 0x1b2   : > { %v463_v30 = vpop.xlane.xlu0 %462 }
 0x1b3   : > { %vm464_vm2 = vcmp.eq.f32.partialorder %v461_v28, %v463_v30  ;;  %v469_v34 = vcvt.f32.s32 %v463_v30  ;;  %v1647_v28 = vld [vmem:[#allocation5 + $0x6c] sm:$0xf] }
 0x1b4   : > { %v465_v32 = vsel %vm464_vm2, %v460_v31, inf  ;;  %v1394_v31 = vld [vmem:[#allocation5 + $0x50] sm:$0xf0] }
 0x1b5   : > { %466 = vmin.xlane.f32.xlu1 %v465_v32  ;;  %v470_v36 = vshll.u32 %v469_v34, 16  ;;  %v501_v32 = vld [vmem:[%s2268_s7] sm:$0xf]  ;;  %v1665_v34 = vld [vmem:[#allocation5 + $0xf4] sm:$0xf0] }
 0x1b6   : > { %1356 = vmatpush.msk.msra.mxu1 %vm505_vm6, %v501_v32 }
 0x228   : > { %v467_v35 = vpop.xlane.xlu1 %466 }
 0x229   : > { %v468_v37 = vcvt.f32.s32 %v467_v35  ;;  %v1464_v35 = vld [vmem:[#allocation5 + $0xc8] sm:$0xf] }
 0x22b   : > { %v2144_v38 = vadd.s32 %v470_v36, %v468_v37  ;;  %v1421_v36 = vor.u32 %v1647_v28, %v1418_v29  ;;  %v1481_v37 = vor.u32 %v1665_v34, %v1480_v33  ;;  %v1954_v29 = vmov 0.0  }
 0x22d   : > { %495 = vst.msk [vmem:[#allocation3] sm:$0xff] %vm494_vm3, %v2144_v38  ;;  %vm472_vm4 = vcmp.eq.s32.totalorder %v2140_v23, %v2144_v38  ;;  %761 = vmatpush.bf16.msrb.mxu1 %v1481_v37  ;;  %778 = vmatpush.bf16.msrb.mxu0 %v1421_v36  ;;  %v1681_v36 = vld [vmem:[#allocation8 + $0x78] sm:$0xff]  ;;  %v1696_v38 = vld [vmem:[#allocation8 + $0xf0] sm:$0xff] }
 0x22e   : > { %v473_v39 = vsel %vm472_vm4, -inf, %v447_v20  ;;  %v1646_v20 = vld [vmem:[#allocation5 + $0x64] sm:$0xf]  ;;  %v1697_v37 = vld [vmem:[#allocation8 + $0xf8] sm:$0xff] }
 0x22f   : > { %v474_v40 = vsel %vm451_vm0, %v473_v39, -inf  ;;  %v1413_v30 = vor.u32 %v1646_v20, %v1410_v21  ;;  %v1368_v20 = vld [vmem:[#allocation5 + $0x8] sm:$0xf]  ;;  %v1637_v21 = vld [vmem:[#allocation5 + $0x14] sm:$0xf0] }
 0x230   : > { %475 = vmax.xlane.f32.xlu1 %v474_v40  ;;  %v1393_v40 = vor.u32 %v1644_v25, %v1392_v24  ;;  %v1369_v22 = vor.u32 %v1637_v21, %v1368_v20 }
 0x231   : > { %752 = vmatpush.bf16.msra.mxu3 %v1413_v30 }
 0x232   : > { %740 = vmatpush.bf16.msra.mxu2 %v1393_v40  ;;  %v1672_v40 = vld [vmem:[#allocation8 + $0x30] sm:$0xff] }
 0x234   : > { %v530_v41 = vld [vmem:[#allocation3] sm:$0xff] }
 0x235   : > { %873 = vperm.xlu0 %1780, %v530_v41   ;;  %v1643_v41 = vld [vmem:[#allocation5 + $0x4c] sm:$0xf] }
 0x2a3   : > { %v476_v42 = vpop.xlane.xlu1 %475 }
 0x2a4   : > { %vm477_vm5 = vcmp.ge.f32.partialorder %v473_v39, %v476_v42  ;;  %v1661_v39 = vld [vmem:[#allocation5 + $0xd4] sm:$0xf0]  ;;  %v1402_v42 = vld [vmem:[#allocation5 + $0x58] sm:$0xf0] }
 0x2a5   : > { %v478_v43 = vsel %vm477_vm5, %v2140_v23, 4  ;;  %v1465_v49 = vor.u32 %v1661_v39, %v1464_v35  ;;  %v1405_v53 = vor.u32 %v1643_v41, %v1402_v42  ;;  %v1673_v35 = vld [vmem:[#allocation8 + $0x38] sm:$0xff]  ;;  %v1680_v41 = vld [vmem:[#allocation8 + $0x70] sm:$0xff] }
 0x2a6   : > { %v2156_v44 = vsel %vm451_vm0, %v478_v43, 2147483647  ;;  %v1397_v43 = vor.u32 %v1642_v27, %v1394_v31 }
 0x2a7   : > { %v481_v45 = vshra.s32 %v2156_v44, 16  ;;  %762 = vmatpush.bf16.msrb.mxu1 %v1465_v49  ;;  %v480_v61 = vand.u32 65535, %v2156_v44  ;;  %779 = vmatpush.bf16.msrb.mxu0 %v1405_v53  ;;  %v1373_v44 = vor.u32 %v1635_v4, %v1370_v5  ;;  %v1678_v49 = vld [vmem:[#allocation8 + $0x60] sm:$0xff]  ;;  %v1693_v53 = vld [vmem:[#allocation8 + $0xd8] sm:$0xff] }
 0x2a8   : > { %753 = vmatpush.bf16.msra.mxu3 %v1397_v43  ;;  %v1671_v43 = vld [vmem:[#allocation8 + $0x28] sm:$0xff] }
 0x2a9   : > { %v2159_v46 = vcvt.s32.f32 %v481_v45  ;;  %v1376_v45 = vld [vmem:[#allocation5 + $0x20] sm:$0xf]  ;;  %v482_v8 = vcvt.s32.f32 %v480_v61 }
 0x2aa   : > { %v1377_v54 = vor.u32 %v1640_v47, %v1376_v45  ;;  %v1679_v45 = vld [vmem:[#allocation8 + $0x68] sm:$0xff] }
 0x2ab   : > { %484 = vmin.xlane.f32.xlu2 %v2159_v46  ;;  %763 = vmatpush.bf16.msrb.mxu1 %v1449_v60  ;;  %v1695_v47 = vld [vmem:[#allocation8 + $0xe8] sm:$0xff] }
 0x2ac   : > { %741 = vmatpush.bf16.msra.mxu2 %v1377_v54  ;;  %754 = vmatpush.bf16.msra.mxu3 %v1381_v57  ;;  %v1668_v54 = vld [vmem:[#allocation8 + $0x10] sm:$0xff]  ;;  %v1667_v57 = vld [vmem:[#allocation8 + $0x8] sm:$0xff] }
 0x2ad   : > { %780 = vmatpush.bf16.msrb.mxu0 %v1389_v0  ;;  %v2176_v60 = vld [vmem:[%s2266_s5] sm:$0xf] }
 0x2ae   : > { %v570_v61 = vperm.slane %v2176_v60, 3  ;;  %v567_v62 = vperm.slane %v2176_v60, 0  ;;  %v568_v63 = vperm.slane %v2176_v60, 1 }
 0x2af   : > { %764 = vmatpush.bf16.msrb.mxu1 %v1433_v9 }
 0x2b0   : > { %742 = vmatpush.bf16.msra.mxu2 %v1361_v3  ;;  %755 = vmatpush.bf16.msra.mxu3 %v1365_v6 }
 0x2b1   : > { %781 = vmatpush.bf16.msrb.mxu0 %v1373_v44 }
 0x2b3   : > { %743 = vmatmul.bf16.vlgmr.msra.gmra.mxu2 %v532_v11  ;;  %756 = vmatmul.bf16.vlgmr.msra.gmra.mxu3 %v532_v11 }
 0x2b4   : > { %782 = vmatmul.bf16.vlgmr.msrb.gmra.mxu0 %v532_v11  ;;  %765 = vmatpush.bf16.msrb.mxu1 %v1417_v14 }
 0x2b5   : > { %1155 = vmatpush.bf16.msrb.mxu2 %v1673_v35  ;;  %1168 = vmatpush.bf16.msrb.mxu3 %v1681_v36 }
 0x2b6   : > { %1194 = vmatpush.bf16.msra.mxu0 %v1697_v37 }
 0x2b8   : > { %766 = vmatpush.bf16.msrb.mxu1 %v1401_v17 }
 0x2b9   : > { %1156 = vmatpush.bf16.msrb.mxu2 %v1672_v40  ;;  %1169 = vmatpush.bf16.msrb.mxu3 %v1680_v41 }
 0x2ba   : > { %1195 = vmatpush.bf16.msra.mxu0 %v1696_v38 }
 0x2bd   : > { %1157 = vmatpush.bf16.msrb.mxu2 %v1671_v43  ;;  %1170 = vmatpush.bf16.msrb.mxu3 %v1679_v45  ;;  %v2209_v43 = vld [vmem:[%s2264_s3] sm:$0xf] }
 0x2be   : > { %1196 = vmatpush.bf16.msra.mxu0 %v1695_v47 }
 0x2c1   : > { %1158 = vmatpush.bf16.msrb.mxu2 %v1670_v48  ;;  %1171 = vmatpush.bf16.msrb.mxu3 %v1678_v49 }
 0x2c2   : > { %1197 = vmatpush.bf16.msra.mxu0 %v1694_v50  ;;  %v871_v50 = vperm.slane %v2209_v43, 3 }
 0x2c5   : > { %1159 = vmatpush.bf16.msrb.mxu2 %v1669_v51  ;;  %1172 = vmatpush.bf16.msrb.mxu3 %v1677_v52  ;;  %v1687_v52 = vld [vmem:[#allocation8 + $0xa8] sm:$0xff] }
 0x2c6   : > { %1198 = vmatpush.bf16.msra.mxu0 %v1693_v53  ;;  %v874_v53 = vpop.permute.xlu0 %873 }
 0x2c9   : > { %1160 = vmatpush.bf16.msrb.mxu2 %v1668_v54  ;;  %1173 = vmatpush.bf16.msrb.mxu3 %v1676_v55 }
 0x2ca   : > { %1199 = vmatpush.bf16.msra.mxu0 %v1692_v56 }
 0x2cd   : > { %1161 = vmatpush.bf16.msrb.mxu2 %v1667_v57  ;;  %1174 = vmatpush.bf16.msrb.mxu3 %v1675_v58  ;;  %v868_v57 = vperm.slane %v2209_v43, 0 }
 0x2ce   : > { %1200 = vmatpush.bf16.msra.mxu0 %v1691_v59 }
 0x2d1   : > { %1175 = vmatpush.bf16.msrb.mxu3 %v1674_v12 }
 0x2d2   : > { %1201 = vmatpush.bf16.msra.mxu0 %v1690_v13 }
 0x31e   : > { %v485_v7 = vpop.xlane.xlu2 %484 }
 0x31f   : > { %vm486_vm7 = vcmp.eq.f32.partialorder %v2159_v46, %v485_v7  ;;  %v1384_v46 = vld [vmem:[#allocation5 + $0x28] sm:$0xf]  ;;  %v491_v24 = vcvt.f32.s32 %v485_v7 }
 0x320   : > { %v487_v10 = vsel %vm486_vm7, %v482_v8, inf  ;;  %v1385_v19 = vor.u32 %v1641_v18, %v1384_v46  ;;  %vm878_vm7 = vcmp.eq.s32.totalorder %v871_v50, %v874_v53 }
 0x321   : > { %488 = vmin.xlane.f32.xlu2 %v487_v10  ;;  %v492_v26 = vshll.u32 %v491_v24, 16 }
 0x322   : > { %767 = vmatpush.bf16.msrb.mxu1 %v1385_v19 }
 0x326   : > { %768 = vmatpush.bf16.msrb.mxu1 %v1369_v22 }
 0x331   : > { %v783_v34 = vpop.f32.mrf.mxu0 }
 0x332   : > { %v2181_v0 = vadd.f32 %v783_v34, %v570_v61  ;;  %v1686_v61 = vld [vmem:[#allocation8 + $0xa0] sm:$0xff] }
 0x334   : > { %v1489_v3 = vmul.f32 -1.442695, %v2181_v0 }
 0x336   : > { %v744_v32 = vpop.f32.mrf.mxu2  ;;  %v757_v33 = vpop.f32.mrf.mxu3  ;;  %1783 = vpow2.f32 %v1489_v3  ;;  %v1685_v3 = vld [vmem:[#allocation8 + $0x98] sm:$0xff] }
 0x337   : > { %v2183_v1 = vadd.f32 %v744_v32, %v567_v62  ;;  %v2185_v2 = vadd.f32 %v757_v33, %v568_v63  ;;  %v1689_v33 = vld [vmem:[#allocation8 + $0xb8] sm:$0xff]  ;;  %v869_v62 = vperm.slane %v2209_v43, 1 }
 0x339   : > { %v785_v42 = vpop.f32.mrf.mxu0  ;;  %v1486_v4 = vmul.f32 -1.442695, %v2183_v1  ;;  %v1487_v5 = vmul.f32 -1.442695, %v2185_v2 }
 0x33a   : > { %v1688_v42 = vld [vmem:[#allocation8 + $0xb0] sm:$0xff] }
 0x33b   : > { %1785 = vpow2.f32 %v1486_v4  ;;  %v569_v4 = vperm.slane %v2176_v60, 2 }
 0x33c   : > { %1787 = vpow2.f32 %v1487_v5  ;;  %v1784_v6 = vpop.eup %1783 }
 0x33d   : > { %v802_v8 = vadd.f32 1.0, %v1784_v6  ;;  %v1683_v6 = vld [vmem:[#allocation8 + $0x88] sm:$0xff] }
 0x33e   : > { %v746_v39 = vpop.f32.mrf.mxu2 }
 0x33f   : > { %1789 = vrcp.f32 %v802_v8  ;;  %vm853_vm10 = vweird.f32 %v802_v8 }
 0x341   : > { %v1786_v7 = vpop.eup %1785 }
 0x342   : > { %v1788_v9 = vpop.eup %1787  ;;  %v799_v44 = vadd.f32 1.0, %v1786_v7 }
 0x343   : > { %v800_v10 = vadd.f32 1.0, %v1788_v9 }
 0x344   : > { %1791 = vrcp.f32 %v799_v44  ;;  %vm808_vm12 = vweird.f32 %v799_v44  ;;  %v812_v32 = vand.u32 2147483647, %v799_v44 }
 0x345   : > { %1793 = vrcp.f32 %v800_v10  ;;  %v1790_v14 = vpop.eup %1789  ;;  %vm823_vm15 = vweird.f32 %v800_v10  ;;  %v829_v35 = vand.u32 2147483648, %v800_v10  ;;  %v827_v39 = vand.u32 2147483647, %v800_v10 }
 0x346   : > { %v849_v16 = vmul.f32 %v1790_v14, %v802_v8  ;;  %vm854_vm11 = vweird.f32 %v1790_v14 }
 0x347   : > { %vm2190_vm14 = vmor %vm853_vm10, %vm854_vm11  ;;  %v830_v45 = vor.u32 1.1754944e-38, %v829_v35  ;;  %vm828_vm5 = vcmp.eq.f32.partialorder %v827_v39, 8.507059e+37  ;;  %vm875_vm10 = vcmp.eq.s32.totalorder %v868_v57, %v874_v53 }
 0x348   : > { %v850_v19 = vsub.f32 1.0, %v849_v16 }
 0x34a   : > { %v1792_v15 = vpop.eup %1791  ;;  %v851_v22 = vmul.f32 %v1790_v14, %v850_v19 }
 0x34b   : > { %v1794_v17 = vpop.eup %1793  ;;  %v804_v46 = vmul.f32 %v1792_v15, %v799_v44  ;;  %vm809_vm13 = vweird.f32 %v1792_v15 }
 0x34c   : > { %v819_v18 = vmul.f32 %v1794_v17, %v800_v10  ;;  %vm2194_vm1 = vmor %vm808_vm12, %vm809_vm13 }
 0x34d   : > { %v805_v20 = vsub.f32 1.0, %v804_v46 }
 0x34e   : > { %v820_v21 = vsub.f32 1.0, %v819_v18 }
 0x34f   : > { %v806_v24 = vmul.f32 %v1792_v15, %v805_v20 }
 0x394   : > { %v489_v25 = vpop.xlane.xlu2 %488 }
 0x395   : > { %v490_v27 = vcvt.f32.s32 %v489_v25  ;;  %v859_v25 = vand.u32 2147483648, %v802_v8 }
 0x397   : > { %v493_v28 = vadd.s32 %v492_v26, %v490_v27  ;;  %v821_v26 = vmul.f32 %v1794_v17, %v820_v21  ;;  %v852_v27 = vadd.f32 %v1790_v14, %v851_v22  ;;  %v860_v36 = vor.u32 1.1754944e-38, %v859_v25 }
 0x399   : > { %496 = vst.msk [vmem:[#allocation4] sm:$0xff] %vm494_vm3, %v493_v28  ;;  %vm497_vm8 = vcmp.eq.s32.totalorder %v2140_v23, %v493_v28  ;;  %v759_v23 = vpop.f32.mrf.mxu3  ;;  %v857_v28 = vand.u32 2147483647, %v802_v8  ;;  %v822_v37 = vadd.f32 %v1794_v17, %v821_v26  ;;  %v856_v40 = vsel %vm2190_vm14, %v1790_v14, %v852_v27  ;;  %v1682_v8 = vld [vmem:[#allocation8 + $0x80] sm:$0xff] }
 0x39a   : > { %vm498_vm9 = vmor %vm472_vm4, %vm497_vm8  ;;  %vm813_vm4 = vcmp.eq.f32.partialorder %v812_v32, 8.507059e+37  ;;  %vm876_vm14 = vcmp.eq.s32.totalorder %v869_v62, %v874_v53 }
 0x39b   : > { %v1355_v30 = vsel %vm498_vm9, 1.0, %v1954_v29  ;;  %v814_v29 = vand.u32 2147483648, %v799_v44  ;;  %vm858_vm2 = vcmp.eq.f32.partialorder %v857_v28, 8.507059e+37 }
 0x39c   : > { %1357 = vmatmul.msk.f32.vlgmr.msra.gmra.mxu1 %vm451_vm0, %v1355_v30  ;;  %vm824_vm0 = vweird.f32 %v1794_v17  ;;  %v861_v47 = vsel %vm858_vm2, %v860_v36, %v856_v40 }
 0x39d   : > { %1181 = vmatpush.bf16.msra.mxu1 %v1689_v33  ;;  %v815_v41 = vor.u32 1.1754944e-38, %v814_v29  ;;  %vm2200_vm3 = vmor %vm823_vm15, %vm824_vm0  ;;  %v866_v51 = vmul.f32 %v861_v47, %v2181_v0 }
 0x39e   : > { %v826_v48 = vsel %vm2200_vm3, %v1794_v17, %v822_v37  ;;  %v870_v17 = vperm.slane %v2209_v43, 2 }
 0x39f   : > { %v831_v54 = vsel %vm828_vm5, %v830_v45, %v826_v48  ;;  %v1628_v59 = vpack.c.bf16 %v866_v51, %v866_v51 }
 0x3a0   : > { %v531_v31 = vld [vmem:[#allocation4] sm:$0xff]  ;;  %v864_v58 = vmul.f32 %v831_v54, %v2185_v2  ;;  %v1684_v2 = vld [vmem:[#allocation8 + $0x90] sm:$0xff] }
 0x3a1   : > { %880 = vperm.xlu1 %1781, %v531_v31   ;;  %v807_v31 = vadd.f32 %v1792_v15, %v806_v24  ;;  %1182 = vmatpush.bf16.msra.mxu1 %v1688_v42 }
 0x3a2   : > { %v1622_v0 = vpack.c.bf16 %v864_v58, %v864_v58 }
 0x3a3   : > { %v811_v38 = vsel %vm2194_vm1, %v1792_v15, %v807_v31 }
 0x3a4   : > { %769 = vmatmul.bf16.vlgmr.msrb.gmra.mxu1 %v532_v11  ;;  %v1666_v11 = vld [vmem:[#allocation8] sm:$0xff]  ;;  %v816_v49 = vsel %vm813_vm4, %v815_v41, %v811_v38 }
 0x3a5   : > { %1162 = vmatpush.bf16.msrb.mxu2 %v1666_v11  ;;  %v863_v55 = vmul.f32 %v816_v49, %v2183_v1  ;;  %1183 = vmatpush.bf16.msra.mxu1 %v1687_v52 }
 0x3a7   : > { %v1619_v63 = vpack.c.bf16 %v863_v55, %v863_v55 }
 0x3a9   : > { %1184 = vmatpush.bf16.msra.mxu1 %v1686_v61 }
 0x3ad   : > { %1185 = vmatpush.bf16.msra.mxu1 %v1685_v3 }
 0x3b1   : > { %1186 = vmatpush.bf16.msra.mxu1 %v1684_v2 }
 0x3b5   : > { %1187 = vmatpush.bf16.msra.mxu1 %v1683_v6 }
 0x3b9   : > { %1188 = vmatpush.bf16.msra.mxu1 %v1682_v8 }
 0x413   : > { %v881_v56 = vpop.permute.xlu1 %880 }
 0x414   : > { %vm885_vm6 = vcmp.eq.s32.totalorder %v871_v50, %v881_v56  ;;  %vm882_vm8 = vcmp.eq.s32.totalorder %v868_v57, %v881_v56  ;;  %vm883_vm11 = vcmp.eq.s32.totalorder %v869_v62, %v881_v56  ;;  %vm884_vm4 = vcmp.eq.s32.totalorder %v870_v17, %v881_v56 }
 0x415   : > { %vm889_vm9 = vmor %vm878_vm7, %vm885_vm6  ;;  %vm877_vm7 = vcmp.eq.s32.totalorder %v870_v17, %v874_v53 }
 0x416   : > { %vm1627_vm12 = vmpackc.low %vm889_vm9, %vm889_vm9 }
 0x417   : > { %vm886_vm13 = vmor %vm875_vm10, %vm882_vm8  ;;  %1629 = vmatmul.msk.bf16.vlgmr.msra.gmra.mxu0 %vm1627_vm12, %v1628_v59 }
 0x418   : > { %vm1618_vm15 = vmpackc.low %vm886_vm13, %vm886_vm13 }
 0x419   : > { %v2219_v1 = vpop.f32.mrf.mxu1  ;;  %1620 = vmatmul.msk.bf16.vlgmr.msrb.gmra.mxu2 %vm1618_vm15, %v1619_v63  ;;  %vm887_vm0 = vmor %vm876_vm14, %vm883_vm11 }
 0x41a   : > { %vm1621_vm1 = vmpackc.low %vm887_vm0, %vm887_vm0 }
 0x41b   : > { %1623 = vmatmul.msk.bf16.vlgmr.msrb.gmra.mxu3 %vm1621_vm1, %v1622_v0  ;;  %vm888_vm8 = vmor %vm877_vm7, %vm884_vm4 }
 0x41c   : > { %vm1624_vm9 = vmpackc.low %vm888_vm8, %vm888_vm8 }
 0x421   : > { %v770_v5 = vpop.f32.mrf.mxu1 }
 0x422   : > { %v771_v7 = vadd.f32 %v770_v5, %v569_v4 }
 0x424   : > { %v1488_v9 = vmul.f32 -1.442695, %v771_v7 }
 0x426   : > { %1795 = vpow2.f32 %v1488_v9 }
 0x429   : > { %v772_v44 = vpop.f32.mrf.mxu1 }
 0x42c   : > { %v1796_v10 = vpop.eup %1795 }
 0x42d   : > { %v801_v11 = vadd.f32 1.0, %v1796_v10 }
 0x42f   : > { %1797 = vrcp.f32 %v801_v11  ;;  %v844_v15 = vand.u32 2147483648, %v801_v11  ;;  %v842_v60 = vand.u32 2147483647, %v801_v11  ;;  %vm838_vm3 = vweird.f32 %v801_v11 }
 0x431   : > { %v845_v18 = vor.u32 1.1754944e-38, %v844_v15  ;;  %vm843_vm6 = vcmp.eq.f32.partialorder %v842_v60, 8.507059e+37 }
 0x435   : > { %v1798_v12 = vpop.eup %1797 }
 0x436   : > { %v834_v13 = vmul.f32 %v1798_v12, %v801_v11  ;;  %vm839_vm2 = vweird.f32 %v1798_v12 }
 0x437   : > { %vm840_vm5 = vmor %vm838_vm3, %vm839_vm2 }
 0x438   : > { %v835_v14 = vsub.f32 1.0, %v834_v13 }
 0x43a   : > { %v836_v16 = vmul.f32 %v1798_v12, %v835_v14 }
 0x43c   : > { %v837_v46 = vadd.f32 %v1798_v12, %v836_v16 }
 0x43e   : > { %v841_v19 = vsel %vm840_vm5, %v1798_v12, %v837_v46 }
 0x43f   : > { %v846_v20 = vsel %vm843_vm6, %v845_v18, %v841_v19 }
 0x440   : > { %v865_v21 = vmul.f32 %v846_v20, %v771_v7 }
 0x442   : > { %v1625_v22 = vpack.c.bf16 %v865_v21, %v865_v21 }
 0x444   : > { %1626 = vmatmul.msk.bf16.vlgmr.msra.gmra.mxu1 %vm1624_vm9, %v1625_v22 }
 0x494   : > { %v1203_v24 = vpop.f32.mrf.mxu0 }
 0x49c   : > { %v1164_v25 = vpop.f32.mrf.mxu2  ;;  %v1205_v26 = vpop.f32.mrf.mxu0 }
 0x49e   : > { %v1177_v27 = vpop.f32.mrf.mxu3 }
 0x49f   : > { %v1178_v30 = vadd.f32 %v1177_v27, %v1164_v25 }
 0x4a4   : > { %v1166_v28 = vpop.f32.mrf.mxu2 }
 0x4a6   : > { %v1179_v29 = vpop.f32.mrf.mxu3 }
 0x4c1   : > { %v1190_v31 = vpop.f32.mrf.mxu1 }
 0x4c2   : > { %v1191_v32 = vadd.f32 %v1190_v31, %v1178_v30 }
 0x4c4   : > { %v1204_v33 = vadd.f32 %v1203_v24, %v1191_v32 }
 0x4c6   : > { %v1207_v34 = vadd.f32 %v1204_v33, %v2219_v1 }
 0x4c8   : > { %1208 = vst [vmem:[%s386_s11] sm:$0xff] %v1207_v34 }
 0x4c9   : > { %v1192_v35 = vpop.f32.mrf.mxu1 }
 0x4ca   : > { %1886 = shalt.err (!%p1883_p9)
}
 0x4cb   : > { %1706 = dma.vmem_to_hbm [thread:$0]  (%p2040_p4), %s1223_s14, 128, %s1225_s16, %s1210_s21  }
 0x4cc PF: > { %p1723_p10 = scmp.ge.s32.totalorder %s1945_s10, 2  ;;  %s1236_s4 = sand.u32 1, %s1925_s27  }
 0x4cd   : > { %s1237_s26 = scalar_lea.sflag [#allocation7], %s1236_s4 }
 0x4ce   : > { %p1716_p11 = pnand %p1723_p10, %p2047_p8 }
 0x4d0   : > { %p1717_p12 = pneg %p1716_p11 }
 0x4d2   : > { %1920 = dma.done.wait (%p1717_p12), %s1237_s26, 128  }
 0x4d3   : > { %1922 = vsyncadd (%p1717_p12), %s1237_s26, 4294967168  ;;  %s23_s10 = sadd.s32 1, %s1945_s10   ;;  %s2284_s15 = sld [smem:[#allocation14_spill]] }
 0x4d4   : > { %p20_p13 = scmp.ge.s32.totalorder %s23_s10, 4   ;;  %s2285_s27 = smov %s1929_s28 }
 0x4d5   : > { %s2286_s28 = smov %s1933_s29  ;;  %s2287_s29 = smov %s2053_s18 }
 0x4d6   : > { %s2288_s30 = smov %s1941_s9  ;;  %22 = sbr.rel (!%p20_p13) target bundleno = 8 (0x8), region = 108 }
 0x4d9   : > { %s2289_s9 = smov %s2284_s15 }
 0x4db   :  { %1243 = vsyncpa [#allocation6], 1 }
 0x4dc   :  { %1245 = vsyncpa [#allocation6 + $0x1], 1 }
 0x4dd   :  { %1246 = vsyncpa [#allocation9], 1 }
 0x4de   :  { %1247 = vsyncpa [#allocation7], 1 }
 0x4df   :  { %1249 = vsyncpa [#allocation7 + $0x1], 1 }

</bundles_post_ra>
